<compile_context>
chip_gen: v7x
topology: tpu7x:2x2x1
jax: 0.10.0
libtpu: 0.0.40
codegen_flags: <defaults>
</compile_context>

<pallas_src>
import jax
import jax.numpy as jnp
from jax.experimental import pallas as pl
from jax.experimental.pallas import tpu as pltpu


def _ge_kernel(x_ref, w_ref, shift_ref, o_ref):
    # x_ref:     (TB, TC, HW)  input tile, HW on lanes
    # w_ref:     (TC, HW)      depthwise weight with BN scale folded in
    # shift_ref: (TC, 1)       folded BN shift (f32)
    # o_ref:     (TB, TC, HW)
    x32 = x_ref[...].astype(jnp.float32)
    w32 = w_ref[...].astype(jnp.float32)
    # Full-spatial depthwise "conv": per-channel weighted sum over lanes (f32 acc).
    s = jnp.sum(x32 * w32[None], axis=-1, keepdims=True)            # (TB, TC, 1)
    gate1 = jax.nn.sigmoid(s + shift_ref[...][None]) + 1.0          # (TB, TC, 1)
    # out = x * gate + x == x * (gate + 1); keep the residual path in the
    # activation dtype (bf16 stays bf16 on v6e/v7x; identical math for f32).
    o_ref[...] = x_ref[...] * gate1.astype(o_ref.dtype)


def _channel_granularity(itemsize):
    if itemsize >= 4:
        return 8
    if itemsize == 2:
        return 16
    return 32


def _pick_tiles(B, C, HW, itemsize):
    """Choose (batch_tile, channel_tile). Targets ~4 MiB x blocks and >=2 grid steps."""
    target = 4 * 1024 * 1024
    gran = _channel_granularity(itemsize)
    row_bytes = HW * itemsize

    # Channel tile: full C if it fits, else a multiple of `gran` (preferring a
    # divisor of C so no padded partial channel blocks are produced).
    if C * row_bytes <= target or C <= gran:
        tc = C
    else:
        tc = max(gran, (target // row_bytes) // gran * gran)
        tc = min(tc, C)
        while tc > gran and C % tc != 0:
            tc -= gran
    n_c = pl.cdiv(C, tc)

    # Batch tile: fill the remaining target with batch slabs (any n_c); this
    # amortizes per-step overhead and weight reuse.
    slab = tc * row_bytes
    tb = max(1, min(B, target // max(1, slab)))
    while tb > 1 and B % tb != 0:
        tb -= 1
    n_b = pl.cdiv(B, tb)

    # Guarantee >=2 grid steps so v7x megacore has independent work to split.
    if n_b * n_c == 1:
        if B > 1:
            tb = max(1, B // 2)
            while tb > 1 and B % tb != 0:
                tb -= 1
        elif C > gran:
            tc = max(gran, (C // 2) // gran * gran)
            while tc > gran and C % tc != 0:
                tc -= gran
    return tb, tc


def _physical_vmem_bytes():
    try:
        return int(pltpu.get_tpu_info().vmem_capacity_bytes)
    except Exception:
        return 64 * 1024 * 1024  # conservative fallback (v7x per-TC)


def ge_block_forward(x_nchw, dw_weight, bn_gamma, bn_beta, bn_mean, bn_var,
                     eps=1e-5):
    """GEBlock forward (learned=True, globalpool=True), inference-mode BN.

    x_nchw:    (B, C, H, W)  input (f32 or bf16)
    dw_weight: (C, H, W)     depthwise conv weight (groups=C, no bias)
    bn_*:      (C,)          BatchNorm2d params / running stats
    """
    B, C, H, W = x_nchw.shape
    HW = H * W
    itemsize = jnp.dtype(x_nchw.dtype).itemsize

    # Fold BN into the weight / a per-channel shift (host-side, tiny).
    scale = (bn_gamma / jnp.sqrt(bn_var + eps)).astype(jnp.float32)          # (C,)
    shift = (bn_beta - bn_mean * scale).astype(jnp.float32).reshape(C, 1)    # (C,1)
    w_cs = dw_weight.reshape(C, HW).astype(jnp.float32) * scale[:, None]     # (C,HW)
    # Store the folded weight in the activation dtype for 16-bit inputs
    # (halves w HBM traffic / VMEM); accumulation stays f32 in the kernel.
    w_dtype = x_nchw.dtype if itemsize == 2 else jnp.float32
    w_cs = w_cs.astype(w_dtype)

    # Free view of NCHW: channels on sublanes, flattened spatial on lanes.
    x_c_hw = x_nchw.reshape(B, C, HW)

    tb, tc = _pick_tiles(B, C, HW, itemsize)
    n_c = pl.cdiv(C, tc)
    n_b = pl.cdiv(B, tb)
    # Grid: channels OUTER, batch INNER -> w/shift block indices are constant
    # across consecutive steps and are not re-DMA'd.
    grid = (n_c, n_b)

    # Explicit VMEM budget (x/out double-buffered; w/shift resident+buffered).
    x_blk = tb * tc * HW * itemsize
    w_blk = tc * HW * jnp.dtype(w_dtype).itemsize
    sh_blk = max(tc, 8) * 128 * 4
    need = 2 * x_blk + 2 * x_blk + 2 * w_blk + 2 * sh_blk
    cap = (_physical_vmem_bytes() * 3) // 4          # ~96 MiB v5e/v6e, ~48 MiB v7x
    vmem_limit = max(16 * 1024 * 1024,
                     min(int(need * 1.25) + (1 << 20), cap))

    out_c_hw = pl.pallas_call(
        _ge_kernel,
        out_shape=jax.ShapeDtypeStruct((B, C, HW), x_nchw.dtype),
        grid_spec=pltpu.PrefetchScalarGridSpec(
            num_scalar_prefetch=0,
            grid=grid,
            in_specs=[
                pl.BlockSpec((tb, tc, HW), lambda c, b: (b, c, 0)),
                pl.BlockSpec((tc, HW), lambda c, b: (c, 0)),
                pl.BlockSpec((tc, 1), lambda c, b: (c, 0)),
            ],
            out_specs=pl.BlockSpec((tb, tc, HW), lambda c, b: (b, c, 0)),
        ),
        compiler_params=pltpu.CompilerParams(
            dimension_semantics=("parallel", "parallel"),
            vmem_limit_bytes=vmem_limit),
    )(x_c_hw, w_cs, shift)

    return out_c_hw.reshape(B, C, H, W)


def _reference(x_nchw, dw_weight, bn_gamma, bn_beta, bn_mean, bn_var, eps=1e-5):
    # Pure-JAX reference of the same math for a sanity check.
    s = jnp.einsum("bchw,chw->bc", x_nchw.astype(jnp.float32),
                   dw_weight.astype(jnp.float32))
    scale = bn_gamma / jnp.sqrt(bn_var + eps)
    shift = bn_beta - bn_mean * scale
    gate = jax.nn.sigmoid(s * scale + shift)[:, :, None, None]
    return (x_nchw * gate + x_nchw).astype(x_nchw.dtype)


if __name__ == "__main__":
    key = jax.random.PRNGKey(0)
    B, C, H, W = 2, 4, 16, 16

    kx, kw = jax.random.split(key)
    x = jax.random.normal(kx, (B, C, H, W), dtype=jnp.float32)

    # Deterministic parameter init (GEBlock(in_planes=C, spatial=[H,W])):
    #  - dwconv weight: (C, 1, H, W) -> stored as (C, H, W), no bias
    #  - BatchNorm2d default init: gamma=1, beta=0, running_mean=0, running_var=1
    dw_weight = 0.01 * jax.random.normal(kw, (C, H, W), dtype=jnp.float32)
    bn_gamma = jnp.ones((C,), jnp.float32)
    bn_beta = jnp.zeros((C,), jnp.float32)
    bn_mean = jnp.zeros((C,), jnp.float32)
    bn_var = jnp.ones((C,), jnp.float32)

    out = ge_block_forward(x, dw_weight, bn_gamma, bn_beta, bn_mean, bn_var)
    out = jax.block_until_ready(out)

    ref = _reference(x, dw_weight, bn_gamma, bn_beta, bn_mean, bn_var)
    assert out.shape == (B, C, H, W)
    assert jnp.allclose(out, ref, atol=1e-5, rtol=1e-5)

    print("KERNEL_OK")
</pallas_src>

<mosaic_0001>
module attributes {stable_mosaic.version = 11 : i64} {
  func.func @_ge_kernel(%arg0: i32, %arg1: i32, %arg2: memref<1x4x256xf32, #tpu.memory_space<vmem>>, %arg3: memref<4x256xf32, #tpu.memory_space<vmem>>, %arg4: memref<4x1xf32, #tpu.memory_space<vmem>>, %arg5: memref<1x4x256xf32, #tpu.memory_space<vmem>>) attributes {dimension_semantics = [#tpu.dimension_semantics<parallel>, #tpu.dimension_semantics<parallel>], iteration_bounds = array<i64: 1, 2>, scalar_prefetch = 0 : i64, scratch_operands = 0 : i64, tpu.core_type = #tpu.core_type<tc>, window_params = [{transform_indices = @transform_0, window_bounds = array<i64: 1, 4, 256>}, {transform_indices = @transform_1, window_bounds = array<i64: 4, 256>}, {transform_indices = @transform_2, window_bounds = array<i64: 4, 1>}, {transform_indices = @transform_3, window_bounds = array<i64: 1, 4, 256>}]} {
    %c0 = arith.constant 0 : index
    %c0_0 = arith.constant 0 : index
    %c0_1 = arith.constant 0 : index
    %0 = vector.load %arg2[%c0, %c0_0, %c0_1] : memref<1x4x256xf32, #tpu.memory_space<vmem>>, vector<1x4x256xf32>
    %c0_2 = arith.constant 0 : index
    %c0_3 = arith.constant 0 : index
    %1 = vector.load %arg3[%c0_2, %c0_3] : memref<4x256xf32, #tpu.memory_space<vmem>>, vector<4x256xf32>
    %2 = vector.shape_cast %1 : vector<4x256xf32> to vector<1x4x256xf32>
    %3 = arith.mulf %0, %2 : vector<1x4x256xf32>
    %cst = arith.constant dense<0.000000e+00> : vector<1x4xf32>
    %4 = vector.multi_reduction <add>, %3, %cst [2] : vector<1x4x256xf32> to vector<1x4xf32>
    %5 = vector.shape_cast %4 : vector<1x4xf32> to vector<1x4x1xf32>
    %c0_4 = arith.constant 0 : index
    %c0_5 = arith.constant 0 : index
    %6 = vector.load %arg4[%c0_4, %c0_5] : memref<4x1xf32, #tpu.memory_space<vmem>>, vector<4x1xf32>
    %7 = vector.shape_cast %6 : vector<4x1xf32> to vector<1x4x1xf32>
    %8 = arith.addf %5, %7 : vector<1x4x1xf32>
    %9 = arith.negf %8 : vector<1x4x1xf32>
    %10 = math.exp %9 : vector<1x4x1xf32>
    %cst_6 = arith.constant 1.000000e+00 : f32
    %11 = vector.broadcast %cst_6 : f32 to vector<1x4x1xf32>
    %12 = arith.addf %11, %10 : vector<1x4x1xf32>
    %13 = arith.divf %11, %12 : vector<1x4x1xf32>
    %cst_7 = arith.constant 1.000000e+00 : f32
    %14 = vector.broadcast %cst_7 : f32 to vector<1x4x1xf32>
    %15 = arith.addf %13, %14 : vector<1x4x1xf32>
    %c0_8 = arith.constant 0 : index
    %c0_9 = arith.constant 0 : index
    %c0_10 = arith.constant 0 : index
    %16 = vector.load %arg2[%c0_8, %c0_9, %c0_10] : memref<1x4x256xf32, #tpu.memory_space<vmem>>, vector<1x4x256xf32>
    %17 = vector.broadcast %15 : vector<1x4x1xf32> to vector<1x4x256xf32>
    %18 = arith.mulf %16, %17 : vector<1x4x256xf32>
    %c0_11 = arith.constant 0 : index
    %c0_12 = arith.constant 0 : index
    %c0_13 = arith.constant 0 : index
    %19 = vector.load %arg5[%c0_11, %c0_12, %c0_13] : memref<1x4x256xf32, #tpu.memory_space<vmem>>, vector<1x4x256xf32>
    tpu.vector_store %arg5[%c0_11, %c0_12, %c0_13], %18 {strides = array<i32>} : memref<1x4x256xf32, #tpu.memory_space<vmem>>, vector<1x4x256xf32>,
    return
  }
  func.func @transform_0(%arg0: i32, %arg1: i32) -> (i32, i32, i32) {
    %c0_i32 = arith.constant 0 : i32
    %c0_i32_0 = arith.constant 0 : i32
    return %arg1, %arg0, %c0_i32 : i32, i32, i32
  }
  func.func @transform_1(%arg0: i32, %arg1: i32) -> (i32, i32) {
    %c0_i32 = arith.constant 0 : i32
    %c0_i32_0 = arith.constant 0 : i32
    return %arg0, %c0_i32 : i32, i32
  }
  func.func @transform_2(%arg0: i32, %arg1: i32) -> (i32, i32) {
    %c0_i32 = arith.constant 0 : i32
    %c0_i32_0 = arith.constant 0 : i32
    return %arg0, %c0_i32 : i32, i32
  }
  func.func @transform_3(%arg0: i32, %arg1: i32) -> (i32, i32, i32) {
    %c0_i32 = arith.constant 0 : i32
    %c0_i32_0 = arith.constant 0 : i32
    return %arg1, %arg0, %c0_i32 : i32, i32, i32
  }
}

</mosaic_0001>

<bundles_post_ra>
// kernel: tpu_custom_call.1
= control target key start
LH: loop header
LB: loop body
LE: loop exit
PB: predicated region body
PF: predicated region fallthrough
CT: control target
= control target key end

     0   :  { %8 = vsyncpa [#allocation3], 0  ;;  %s817_s0 = inlined_call_operand.hbm [shape: f32[2,4,256], index: 0, kind: input, shape index: {}]   ;;  %s818_s1 = inlined_call_operand.vmem [shape: f32[4,256], index: 1, kind: input, shape index: {}]   ;;  %s819_s2 = inlined_call_operand.vmem [shape: f32[4,1], index: 2, kind: input, shape index: {}]   ;;  %s820_s3 = inlined_call_operand.hbm [shape: f32[2,4,256], index: 3, kind: output, shape index: {}]  }
   0x1   :  { %10 = vsyncpa [#allocation3 + $0x1], 0 }
   0x2   :  { %11 = vsyncpa [#allocation4], 0 }
   0x3   :  { %13 = vsyncpa [#allocation4 + $0x1], 0  ;;  %s635_s12 = smov 0   ;;  %s637_s13 = smov 0  }
   0x4   :  { %s639_s14 = smov 0   ;;  %s641_s15 = smov 0  }
   0x5   :  { %s643_s16 = smov 0   ;;  %s645_s17 = smov 0  }
   0x6 LB: > { %s408_s18 = sadd.s32 4294967295, %s609_s17   ;;  %s409_s19 = sadd.s32 4294967294, %s609_s17   ;;  %s609_s17 = sphi %s645_s17, %s19_s17   ;;  %s605_s16 = sphi %s643_s16, %s836_s16   ;;  %s601_s15 = sphi %s641_s15, %s835_s15   ;;  %s597_s14 = sphi %s639_s14, %s834_s14   ;;  %s593_s13 = sphi %s637_s13, %s833_s13   ;;  %s589_s12 = sphi %s635_s12, %s832_s12  }
   0x7   : > { %s28_s20 = sadd.s32 1, %s605_s16  ;;  %s40_s21 = sadd.s32 1, %s597_s14 }
   0x8   : > { %p29_p0 = scmp.ge.s32.totalorder %s28_s20, 2  ;;  %p47_p1 = scmp.ne.s32.totalorder %s597_s14, %s593_s13 }
   0x9   : > { %p48_p2 = scmp.eq.s32.totalorder %s609_s17, 0  ;;  %p53_p3 = scmp.ne.s32.totalorder %s593_s13, %s589_s12 }
   0xa   : > { %s838_s20 = smov (%p29_p0, %s28_s20), 0  ;;  %p54_p5 = scmp.eq.s32.totalorder %s408_s18, 0 }
   0xb   : > { %p676_p4 = por %p48_p2, %p47_p1  ;;  %s35_s23 = ssub.s32 %s605_s16, %s838_s20 }
   0xc   : > { %p131_p6 = scmp.eq.s32.totalorder %s408_s18, 1  ;;  %p38_p7 = scmp.eq.s32.totalorder %s35_s23, 0 }
   0xd   : > { %p682_p8 = por %p54_p5, %p53_p3  ;;  %p137_p10 = scmp.eq.s32.totalorder %s409_s19, 1 }
   0xe   : > { %p686_p9 = por %p131_p6, %p47_p1  ;;  %p440_p13 = scmp.lt.s32.totalorder %s609_s17, 2 }
   0xf   : > { %s691_s26 = scalar_select %p38_p7, %s597_s14, %s40_s21  }
  0x10   : > { %s824_s25 = scalar_select %p686_p9, 1, 0 }
  0x11   : > { %p693_p11 = por %p137_p10, %p53_p3  ;;  %s172_s28 = sand.u32 1, %s597_s14  }
  0x12   : > { %s414_s29 = sshll.u32 %s172_s28, 3  ;;  %s426_s30 = sshll.u32 %s605_s16, 7 }
  0x13   : > { %s825_s27 = scalar_select %p693_p11, 1, 0 }
  0x14   : > { %s704_s6 = scalar_lea.hbm %s817_s0, %s426_s30  ;;  %s176_s7 = scalar_lea.vmem [#allocation2], %s414_s29 }
  0x15   : > { %s186_s8 = sshll.u32 %s176_s7, 4  ;;  %p710_p0 = pnand %p440_p13, %p676_p4  ;;  %s706_s8 = int_to_ptr.vmem [resolvable:$true] %s186_s8 }
  0x16   : > { %s173_s10 = scalar_lea.sflag [#allocation3], %s172_s28  ;;  %s497_s11 = scalar_lea.hbm %s704_s6, 128 }
  0x17   : > { %p498_p3 = scmp.ne.s32.totalorder %s704_s6, %s497_s11  ;;  %p499_p5 = pneg %p710_p0 }
  0x18   : > { %s502_s21 = scalar_lea.hbm %s817_s0, 256  ;;  %p503_p4 = scmp.lt.u32.totalorder %s704_s6, %s817_s0 }
  0x19   : > { %p500_p6 = pnand %p499_p5, %p498_p3  ;;  %p504_p10 = scmp.lt.u32.totalorder %s502_s21, %s497_s11 }
  0x1a   : > { %p506_p12 = scmp.lt.u32.totalorder %s497_s11, %s704_s6 }
  0x1b   : > { %p501_p7 = pneg %p500_p6  ;;  %p505_p13 = por %p504_p10, %p503_p4 }
  0x1d   : > { %p507_p1 = por %p506_p12, %p505_p13 }
  0x1f   : > { %p508_p2 = pnand %p507_p1, %p501_p7 }
  0x21   : > { %511 = shalt.err (!%p508_p2)
}
  0x22   : > { %s512_s28 = scalar_lea.vmem %s706_s8, 128  ;;  %s611_s29 = smov [#allocation2]  }
  0x23   : > { %p513_p3 = scmp.ne.s32.totalorder %s706_s8, %s512_s28  ;;  %s517_s30 = sshll.u32 %s611_s29, 4  ;;  %s518_s30 = int_to_ptr.vmem [resolvable:$false] %s517_s30 }
  0x24   : > { %s519_s4 = scalar_lea.vmem %s518_s30, 256  ;;  %p520_p9 = scmp.lt.s32.totalorder %s706_s8, %s518_s30 }
  0x25   : > { %p515_p6 = pnand %p513_p3, %p499_p5  ;;  %p521_p4 = scmp.lt.s32.totalorder %s519_s4, %s512_s28 }
  0x27   : > { %p516_p11 = pneg %p515_p6  ;;  %p522_p10 = por %p521_p4, %p520_p9 }
  0x29   : > { %p523_p12 = pnand %p522_p10, %p516_p11 }
  0x2b   : > { %526 = shalt.err (!%p523_p12)
}
  0x2c   : > { %435 = dma.hbm_to_vmem [thread:$0]  (!%p710_p0), %s704_s6, 128, %s706_s8, %s173_s10  }
  0x2d   : > { %p827_p1 = scmp.lt.s32.totalorder %s609_s17, 3  ;;  %p828_p2 = scmp.ge.s32.totalorder %s609_s17, 1 }
  0x2f   : > { %p192_p5 = pnand %p828_p2, %p827_p1 }
  0x30   : > { %s746_s5 = sand.u32 (!%p192_p5), 1, %s593_s13  }
  0x31   : > { %195 = sbr.rel (%p192_p5) target bundleno = 384 (0x180), region = 32  ;;  %s418_s7 = sshll.u32 (!%p192_p5), %s746_s5, 3 }
  0x32   : > { %s198_s11 = scalar_lea.sflag (!%p192_p5), [#allocation3], %s746_s5  ;;  %s201_s9 = scalar_lea.vmem (!%p192_p5), [#allocation2], %s418_s7 }
  0x38   : > { %580 = dma.done.wait (%p682_p8), %s198_s11, 128  }
  0x39   : > { %582 = vsyncadd (%p682_p8), %s198_s11, 4294967168  ;;  %v242_v0 = vld [vmem:[%s201_s9] sm:$0xff]  ;;  %vm248_vm0 = vcmask 1043456   ;;  %v612_v7 = vmov 0   ;;  %v613_v16 = vmov 839922192   ;;  %v270_v18 = vlaneseq }
  0x3a   : > { %v243_v1 = vld [vmem:[%s818_s1] sm:$0xff]  ;;  %492 = vset.pattern.permute.xlu0 %v612_v7  ;;  %v268_v17 = vunpack.c.l.s4 %v613_v16  ;;  %s427_s24 = sshll.u32 %s601_s15, 7  ;;  %s232_s19 = scalar_lea.vmem [#allocation5], %s418_s7 }
  0x3b   : > { %v244_v2 = vmul.f32 %v243_v1, %v242_v0  ;;  %v254_v8 = vld [vmem:[%s819_s2] sm:$0xf]  ;;  %v271_v20 = vshrl.u32 %v270_v18, 7  ;;  %s294_s21 = sshll.u32 %s232_s19, 4  ;;  %s768_s28 = scalar_lea.hbm %s820_s3, %s427_s24  ;;  %s770_s21 = int_to_ptr.vmem [resolvable:$true] %s294_s21 }
  0x3c   : > { %v269_v19 = vunpack.c.0.s8 %v268_v17  ;;  %s278_s29 = scalar_lea.sflag [#allocation4], %s746_s5  ;;  %s527_s30 = scalar_lea.vmem %s770_s21, 128 }
  0x3d   : > { %v246_v3 = vcombine.high %v244_v2, %v244_v2  ;;  %v249_v4 = vsel %vm248_vm0, %v244_v2, 0.0  ;;  %p528_p8 = scmp.ne.s32.totalorder %s770_s21, %s527_s30  ;;  %p829_p9 = scmp.ne.s32.totalorder %s824_s25, 0 }
  0x3e   : > { %v272_v21 = vsub.s32 %v269_v19, %v271_v20  ;;  %s614_s15 = smov [#allocation5]  }
  0x3f   : > { %v250_v5 = vsel %vm248_vm0, %v246_v3, 0.0  ;;  %p529_p11 = pnand %p528_p8, %p829_p9  ;;  %s531_s4 = sshll.u32 %s614_s15, 4  ;;  %s532_s4 = int_to_ptr.vmem [resolvable:$false] %s531_s4 }
  0x40   : > { %v251_v6 = vadd.f32 %v250_v5, %v249_v4  ;;  %s533_s7 = scalar_lea.vmem %s532_s4, 256  ;;  %p534_p7 = scmp.lt.s32.totalorder %s770_s21, %s532_s4 }
  0x41   : > { %p530_p0 = pneg %p529_p11  ;;  %p535_p13 = scmp.lt.s32.totalorder %s533_s7, %s527_s30 }
  0x42   : > { %252 = vadd.xlane.f32.xlu0 %v251_v6 }
  0x43   : > { %p536_p3 = por %p535_p13, %p534_p7 }
  0x45   : > { %p537_p6 = pnand %p536_p3, %p530_p0 }
  0xcf   : > { %v253_v9 = vpop.xlane.xlu0 %252 }
  0xd0   : > { %v255_v10 = vadd.f32 %v254_v8, %v253_v9 }
  0xd2   : > { %v420_v11 = vmul.f32 -1.442695, %v255_v10 }
  0xd4   : > { %493 = vpow2.f32 %v420_v11 }
  0xde   : > { %v494_v12 = vpop.eup %493 }
  0xdf   : > { %v259_v13 = vadd.f32 1.0, %v494_v12 }
  0xe1   : > { %495 = vrcp.f32 %v259_v13 }
  0xeb   : > { %v496_v14 = vpop.eup %495 }
  0xec   : > { %v262_v15 = vadd.f32 1.0, %v496_v14 }
  0xee   : > { %265 = vperm.xlu0 %492, %v262_v15  }
 0x16d   : > { %v266_v22 = vpop.permute.xlu0 %265 }
 0x16e   : > { %v273_v23 = vrot.slane %v266_v22, %v272_v21 }
 0x170   : > { %v275_v24 = vmul.f32 %v273_v23, %v242_v0 }
 0x172   : > { %276 = vst [vmem:[%s232_s19] sm:$0xff] %v275_v24 }
 0x173   : > { %540 = shalt.err (!%p537_p6)
}
 0x174   : > { %s541_s5 = scalar_lea.hbm %s768_s28, 128  ;;  %s545_s6 = scalar_lea.hbm %s820_s3, 256 }
 0x175   : > { %p542_p4 = scmp.ne.s32.totalorder %s768_s28, %s541_s5  ;;  %p546_p1 = scmp.lt.u32.totalorder %s768_s28, %s820_s3 }
 0x176   : > { %p547_p2 = scmp.lt.u32.totalorder %s545_s6, %s541_s5  ;;  %p549_p8 = scmp.lt.u32.totalorder %s541_s5, %s768_s28 }
 0x177   : > { %p543_p10 = pnand %p542_p4, %p829_p9 }
 0x178   : > { %p548_p5 = por %p547_p2, %p546_p1 }
 0x179   : > { %p544_p12 = pneg %p543_p10 }
 0x17a   : > { %p550_p11 = por %p549_p8, %p548_p5 }
 0x17c   : > { %p551_p0 = pnand %p550_p11, %p544_p12 }
 0x17e   : > { %554 = shalt.err (!%p551_p0)
}
 0x17f   : > { %430 = dma.vmem_to_hbm [thread:$0]  (%p829_p9), %s770_s21, 128, %s768_s28, %s278_s29  }
 0x180 PF: > { %s306_s18 = sand.u32 1, %s589_s12   ;;  %p830_p7 = scmp.ne.s32.totalorder %s825_s27, 0 }
 0x181   : > { %p831_p13 = scmp.ge.s32.totalorder %s609_s17, 2  ;;  %s307_s24 = scalar_lea.sflag [#allocation4], %s306_s18 }
 0x183   : > { %p437_p3 = pnand %p831_p13, %p830_p7 }
 0x185   : > { %584 = dma.done.wait (!%p437_p3), %s307_s24, 128  }
 0x186   : > { %586 = vsyncadd (!%p437_p3), %s307_s24, 4294967168  ;;  %s19_s17 = sadd.s32 1, %s609_s17   ;;  %s832_s12 = smov %s593_s13 }
 0x187   : > { %p16_p6 = scmp.ge.s32.totalorder %s19_s17, 4   ;;  %s833_s13 = smov %s597_s14 }
 0x188   : > { %s834_s14 = smov %s691_s26  ;;  %s835_s15 = smov %s605_s16 }
 0x189   : > { %s836_s16 = smov %s838_s20  ;;  %18 = sbr.rel (!%p16_p6) target bundleno = 6 (0x6), region = 83 }
 0x190   :  { %312 = vsyncpa [#allocation3], 1 }
 0x191   :  { %314 = vsyncpa [#allocation3 + $0x1], 1 }
 0x192   :  { %315 = vsyncpa [#allocation4], 1 }
 0x193   :  { %317 = vsyncpa [#allocation4 + $0x1], 1 }

</bundles_post_ra>
